<compile_context>
chip_gen: v7x
topology: tpu7x:2x2x1
jax: 0.10.0
libtpu: 0.0.40
codegen_flags: <defaults>
</compile_context>

<pallas_src>
import math

import jax
import jax.numpy as jnp
from jax.experimental import pallas as pl
from jax.experimental.pallas import tpu as pltpu

_LOG2 = math.log(2.0)


def _round_up(x, m):
    return (x + m - 1) // m * m


def _elementwise_dtype():
    # bf16 VALU/EUP exist on v6e / v7x; keep the elementwise chain f32 elsewhere.
    try:
        kind = jax.devices()[0].device_kind.lower()
    except Exception:
        return jnp.float32
    if ("v6" in kind) or ("v7" in kind) or ("7x" in kind):
        return jnp.bfloat16
    return jnp.float32


def energy_kernel(scal_ref, x_ref, cnt_ref, w1_ref, b1_ref, w2t_ref,
                  y_ref, acc_ref):
    # scal_ref: (3,)  f32 SMEM   [mean, stddev, b2]          (scalar prefetch)
    # x_ref:    (TB, TA, D) bf16 atom representations for this chunk
    # cnt_ref:  (TB, 1, 1)  i32  number of real atoms per molecule
    # w1_ref:   (D, H) bf16,  b1_ref: (1, H) ew,  w2t_ref: (1, H) f32 (= w2.T)
    # y_ref:    (TB, 1) f32 output block (resident across atom chunks)
    # acc_ref:  (TB, H) f32 scratch - masked sum of hidden features / molecule
    #
    # NOTE: the atom-chunk axis MUST remain the innermost grid axis and be
    # marked "arbitrary"; the acc_ref init/finalize pattern relies on that
    # sequential order (chunk axis 'parallel' or reordered => wrong energies).
    c = pl.program_id(1)
    tb, ta, d = x_ref.shape
    hdim = w1_ref.shape[1]

    @pl.when(c == 0)
    def _init():
        acc_ref[...] = jnp.zeros_like(acc_ref)

    # Layer 1 on the MXU (bf16 operands, f32 accumulation).
    x2 = x_ref[...].reshape(tb * ta, d)
    h = jnp.dot(x2, w1_ref[...], preferred_element_type=jnp.float32)

    # shifted softplus in the elementwise dtype (bf16 on v6e/v7x, f32 on v5e).
    ew = b1_ref.dtype
    h = h.astype(ew) + b1_ref[...]
    h = jnp.logaddexp(h, jnp.zeros((), ew)) - jnp.asarray(_LOG2, ew)

    # In-kernel mask from per-molecule atom counts (no mask HBM stream).
    atom_idx = jax.lax.broadcasted_iota(jnp.int32, (tb, ta, 1), 1) + c * ta
    mask = (atom_idx < cnt_ref[...]).astype(ew)              # (TB, TA, 1)

    # Masked sum-pool over this atom chunk, accumulated in f32.
    hm = h.reshape(tb, ta, hdim) * mask
    acc_ref[...] += jnp.sum(hm.astype(jnp.float32), axis=1)  # (TB, H)

    @pl.when(c == pl.num_programs(1) - 1)
    def _finalize():
        mean = scal_ref[0]
        std = scal_ref[1]
        b2 = scal_ref[2]
        # Layer 2 fused with pooling:
        #   y = (sum_a mask*h) @ w2 * std + n_atoms * (b2*std + mean)
        pooled = acc_ref[...]                                        # (TB, H)
        y = jnp.sum(pooled * w2t_ref[...], axis=1, keepdims=True)    # (TB, 1)
        n_at = cnt_ref[...].reshape(tb, 1).astype(jnp.float32)       # (TB, 1)
        y_ref[...] = y * std + n_at * (b2 * std + mean)


def energy_forward(representation, atom_mask, params, mean, stddev, *,
                   tile_a=1024, tile_b=8):
    """representation: (B, A, n_in) f32; atom_mask: (B, A) 0/1 f32 -> (B, 1) f32.

    atom_mask is assumed to be the standard SchNetPack padding mask: real atoms
    form a contiguous prefix of the atom axis (mask = [1]*n_atoms + [0]*pad).
    """
    B, A, D = representation.shape
    H = params["w1"].shape[1]
    ew = _elementwise_dtype()

    # Molecule blocking (multiple of 8 sublanes) and atom tiling (multiple of
    # 16 rows for bf16 sublane packing).
    TILE_B = min(_round_up(B, 8), _round_up(tile_b, 8))
    B_pad = _round_up(B, TILE_B)
    TILE_A = min(_round_up(A, 16), _round_up(tile_a, 16))
    A_pad = _round_up(A, TILE_A)
    n_b_blocks = B_pad // TILE_B
    n_chunks = A_pad // TILE_A

    x = representation.astype(jnp.bfloat16)
    if (B_pad, A_pad) != (B, A):
        # zero-padded atoms / molecules carry a zero count -> excluded in-kernel
        x = jnp.pad(x, ((0, B_pad - B), (0, A_pad - A), (0, 0)))

    # Per-molecule real-atom counts (padded molecules get 0 atoms -> energy 0).
    counts = jnp.sum(atom_mask.astype(jnp.float32), axis=1).astype(jnp.int32)
    counts = jnp.pad(counts, (0, B_pad - B)).reshape(B_pad, 1, 1)

    w1 = params["w1"].astype(jnp.bfloat16)                   # (D, H)
    b1 = params["b1"].reshape(1, H).astype(ew)               # (1, H)
    w2t = params["w2"].reshape(1, H).astype(jnp.float32)     # (1, H) = w2.T
    scal = jnp.concatenate([
        jnp.asarray([mean], jnp.float32),
        jnp.asarray([stddev], jnp.float32),
        params["b2"].reshape(-1).astype(jnp.float32),
    ])  # (3,) -> SMEM via scalar prefetch

    grid_spec = pltpu.PrefetchScalarGridSpec(
        num_scalar_prefetch=1,
        grid=(n_b_blocks, n_chunks),
        in_specs=[
            pl.BlockSpec((TILE_B, TILE_A, D), lambda b, c, scal: (b, c, 0)),
            pl.BlockSpec((TILE_B, 1, 1), lambda b, c, scal: (b, 0, 0)),
            # grid-invariant weights: index_map is constant, so Mosaic keeps the
            # revisited block resident (no per-step re-DMA).
            pl.BlockSpec((D, H), lambda b, c, scal: (0, 0)),
            pl.BlockSpec((1, H), lambda b, c, scal: (0, 0)),
            pl.BlockSpec((1, H), lambda b, c, scal: (0, 0)),
        ],
        out_specs=pl.BlockSpec((TILE_B, 1), lambda b, c, scal: (b, 0)),
        scratch_shapes=[
            pltpu.VMEM((TILE_B, H), jnp.float32),   # per-molecule hidden sums
        ],
    )

    cost = pl.CostEstimate(
        flops=2 * B_pad * A_pad * D * H + 2 * B_pad * H,
        transcendentals=2 * B_pad * A_pad * H,        # exp + log1p per softplus
        bytes_accessed=(B_pad * A_pad * D * 2         # x (bf16)
                        + B_pad * 4                   # atom counts
                        + D * H * 2 + 2 * H * 4       # weights
                        + B_pad * 4 + 3 * 4),         # out + scalars
    )

    y = pl.pallas_call(
        energy_kernel,
        out_shape=jax.ShapeDtypeStruct((B_pad, 1), jnp.float32),
        grid_spec=grid_spec,
        compiler_params=pltpu.CompilerParams(
            dimension_semantics=("parallel", "arbitrary")),
        cost_estimate=cost,
    )(scal, x, counts, w1, b1, w2t)

    return y[:B]


def init_params(key, n_in):
    """Pyramidal MLP for n_layers=2: n_in -> n_in//2 -> 1 (deterministic init)."""
    hidden = n_in // 2
    k1, k2 = jax.random.split(key)
    w1 = jax.random.normal(k1, (n_in, hidden), dtype=jnp.float32) * (1.0 / math.sqrt(n_in))
    b1 = jnp.zeros((1, hidden), dtype=jnp.float32)
    w2 = jax.random.normal(k2, (hidden, 1), dtype=jnp.float32) * (1.0 / math.sqrt(hidden))
    b2 = jnp.zeros((1, 1), dtype=jnp.float32)
    return {"w1": w1, "b1": b1, "w2": w2, "b2": b2}


def energy_reference(representation, atom_mask, params, mean, stddev):
    """Plain-JAX (f32) reference of the same forward pass."""
    h = representation @ params["w1"] + params["b1"][0]
    h = jnp.logaddexp(h, 0.0) - math.log(2.0)
    yi = h @ params["w2"] + params["b2"][0]
    yi = yi * stddev + mean
    return jnp.sum(yi * atom_mask[..., None], axis=1)


# TODO(synk): atomref embedding lookup skipped (atomref=None is the module default).
# TODO(synk): aggregation_mode='avg' not implemented (module default is 'sum').
# TODO(synk): requires_dr force branch (autograd w.r.t. positions) not translated.
# TODO(synk): optional fp8 (e4m3) layer-1 inputs on v7x left out (accuracy trade).

if __name__ == "__main__":
    B, A, n_in = 2, 8, 32  # molecules, atoms per molecule, representation dim

    key = jax.random.PRNGKey(0)
    k_rep, k_mask, k_par = jax.random.split(key, 3)

    representation = jax.random.normal(k_rep, (B, A, n_in), dtype=jnp.float32)
    # mask: last 2 atoms of molecule 1 are padding (contiguous-prefix layout)
    atom_mask = jnp.ones((B, A), dtype=jnp.float32)
    atom_mask = atom_mask.at[1, 6:].set(0.0)

    params = init_params(k_par, n_in)
    mean, stddev = 0.0, 1.0  # module defaults

    y = energy_forward(representation, atom_mask, params, mean, stddev)
    jax.block_until_ready(y)

    y_ref = energy_reference(representation, atom_mask, params, mean, stddev)
    assert y.shape == (B, 1)
    # kernel runs layer 1 in bf16 (f32 accumulation) and, on v6e/v7x, the
    # softplus chain in bf16 -> loose tolerance
    assert jnp.allclose(y, y_ref, atol=5e-2, rtol=5e-2)

    print("KERNEL_OK")
</pallas_src>

<mosaic_0001>
module attributes {stable_mosaic.version = 11 : i64} {
  func.func @energy_kernel(%arg0: i32, %arg1: i32, %arg2: memref<3xf32, #tpu.memory_space<smem>>, %arg3: memref<8x16x32xbf16, #tpu.memory_space<vmem>>, %arg4: memref<8x1x1xi32, #tpu.memory_space<vmem>>, %arg5: memref<32x16xbf16, #tpu.memory_space<vmem>>, %arg6: memref<1x16xf32, #tpu.memory_space<vmem>>, %arg7: memref<1x16xf32, #tpu.memory_space<vmem>>, %arg8: memref<8x1xf32, #tpu.memory_space<vmem>>, %arg9: memref<8x16xf32, #tpu.memory_space<vmem>>) attributes {dimension_semantics = [#tpu.dimension_semantics<parallel>, #tpu.dimension_semantics<arbitrary>], iteration_bounds = array<i64: 1, 1>, scalar_prefetch = 1 : i64, scratch_operands = 1 : i64, tpu.core_type = #tpu.core_type<tc>, window_params = [{transform_indices = @transform_0, window_bounds = array<i64: 8, 16, 32>}, {transform_indices = @transform_1, window_bounds = array<i64: 8, 1, 1>}, {pipeline_mode = #tpu.pipeline_mode<synchronous>, transform_indices = @transform_2, window_bounds = array<i64: 32, 16>}, {pipeline_mode = #tpu.pipeline_mode<synchronous>, transform_indices = @transform_3, window_bounds = array<i64: 1, 16>}, {pipeline_mode = #tpu.pipeline_mode<synchronous>, transform_indices = @transform_4, window_bounds = array<i64: 1, 16>}, {transform_indices = @transform_5, window_bounds = array<i64: 8, 1>}]} {
    %c0_i32 = arith.constant 0 : i32
    %0 = arith.cmpi eq, %arg1, %c0_i32 : i32
    %1 = arith.extui %0 : i1 to i32
    %c0_i32_0 = arith.constant 0 : i32
    %2 = arith.cmpi ne, %1, %c0_i32_0 : i32
    scf.if %2 {
      %cst_20 = arith.constant 0.000000e+00 : f32
      %45 = vector.broadcast %cst_20 : f32 to vector<8x16xf32>
      %c0_21 = arith.constant 0 : index
      %c0_22 = arith.constant 0 : index
      %46 = vector.load %arg9[%c0_21, %c0_22] : memref<8x16xf32, #tpu.memory_space<vmem>>, vector<8x16xf32>
      tpu.vector_store %arg9[%c0_21, %c0_22], %45 {strides = array<i32>} : memref<8x16xf32, #tpu.memory_space<vmem>>, vector<8x16xf32>,
    } else {
    }
    %c0 = arith.constant 0 : index
    %c0_1 = arith.constant 0 : index
    %c0_2 = arith.constant 0 : index
    %3 = vector.load %arg3[%c0, %c0_1, %c0_2] : memref<8x16x32xbf16, #tpu.memory_space<vmem>>, vector<8x16x32xbf16>
    %4 = vector.shape_cast %3 : vector<8x16x32xbf16> to vector<128x32xbf16>
    %c0_3 = arith.constant 0 : index
    %c0_4 = arith.constant 0 : index
    %5 = vector.load %arg5[%c0_3, %c0_4] : memref<32x16xbf16, #tpu.memory_space<vmem>>, vector<32x16xbf16>
    %cst = arith.constant dense<0.000000e+00> : vector<128x16xf32>
    %6 = tpu.matmul %4, %5, %cst {dimension_numbers = #tpu.dot_dimension_numbers<[1], [0], [0], [1], [0, 0, 1, 1], [], []>} : vector<128x32xbf16>, vector<32x16xbf16>, vector<128x16xf32> -> vector<128x16xf32>
    %c0_5 = arith.constant 0 : index
    %c0_6 = arith.constant 0 : index
    %7 = vector.load %arg6[%c0_5, %c0_6] : memref<1x16xf32, #tpu.memory_space<vmem>>, vector<1x16xf32>
    %8 = vector.broadcast %7 : vector<1x16xf32> to vector<128x16xf32>
    %9 = arith.addf %6, %8 : vector<128x16xf32>
    %cst_7 = arith.constant 0.000000e+00 : f32
    %10 = vector.broadcast %cst_7 : f32 to vector<128x16xf32>
    %11 = arith.maximumf %9, %10 : vector<128x16xf32>
    %12 = vector.broadcast %cst_7 : f32 to vector<128x16xf32>
    %13 = arith.subf %9, %12 : vector<128x16xf32>
    %14 = arith.cmpf one, %13, %13 : vector<128x16xf32>
    %15 = vector.broadcast %cst_7 : f32 to vector<128x16xf32>
    %16 = arith.addf %9, %15 : vector<128x16xf32>
    %17 = math.absf %13 : vector<128x16xf32>
    %cst_8 = arith.constant 0.000000e+00 : f32
    %18 = vector.broadcast %cst_8 : f32 to vector<128x16xf32>
    %19 = arith.subf %18, %17 : vector<128x16xf32>
    %20 = math.exp %19 : vector<128x16xf32>
    %21 = math.log1p %20 : vector<128x16xf32>
    %22 = arith.addf %11, %21 : vector<128x16xf32>
    %23 = arith.select %14, %16, %22 : vector<128x16xi1>, vector<128x16xf32>
    %cst_9 = arith.constant 0.693147182 : f32
    %24 = vector.broadcast %cst_9 : f32 to vector<128x16xf32>
    %25 = arith.subf %23, %24 : vector<128x16xf32>
    %26 = tpu.iota {dimensions = array<i32: 1>} : vector<8x16x1xi32>
    %c16_i32 = arith.constant 16 : i32
    %27 = arith.muli %arg1, %c16_i32 : i32
    %28 = vector.broadcast %27 : i32 to vector<8x16x1xi32>
    %29 = arith.addi %26, %28 : vector<8x16x1xi32>
    %c0_10 = arith.constant 0 : index
    %c0_11 = arith.constant 0 : index
    %c0_12 = arith.constant 0 : index
    %30 = vector.load %arg4[%c0_10, %c0_11, %c0_12] : memref<8x1x1xi32, #tpu.memory_space<vmem>>, vector<8x1x1xi32>
    %31 = vector.broadcast %30 : vector<8x1x1xi32> to vector<8x16x1xi32>
    %32 = arith.cmpi slt, %29, %31 : vector<8x16x1xi32>
    %33 = arith.extui %32 : vector<8x16x1xi1> to vector<8x16x1xi32>
    %34 = arith.sitofp %33 : vector<8x16x1xi32> to vector<8x16x1xf32>
    %35 = vector.shape_cast %25 : vector<128x16xf32> to vector<8x16x16xf32>
    %36 = vector.broadcast %34 : vector<8x16x1xf32> to vector<8x16x16xf32>
    %37 = arith.mulf %35, %36 : vector<8x16x16xf32>
    %c0_13 = arith.constant 0 : index
    %c0_14 = arith.constant 0 : index
    %38 = vector.load %arg9[%c0_13, %c0_14] : memref<8x16xf32, #tpu.memory_space<vmem>>, vector<8x16xf32>
    %cst_15 = arith.constant dense<0.000000e+00> : vector<8x16xf32>
    %39 = vector.multi_reduction <add>, %37, %cst_15 [1] : vector<8x16x16xf32> to vector<8x16xf32>
    %40 = arith.addf %38, %39 : vector<8x16xf32>
    %c0_16 = arith.constant 0 : index
    %c0_17 = arith.constant 0 : index
    %41 = vector.load %arg9[%c0_16, %c0_17] : memref<8x16xf32, #tpu.memory_space<vmem>>, vector<8x16xf32>
    tpu.vector_store %arg9[%c0_16, %c0_17], %40 {strides = array<i32>} : memref<8x16xf32, #tpu.memory_space<vmem>>, vector<8x16xf32>,
    %c0_i32_18 = arith.constant 0 : i32
    %42 = arith.cmpi eq, %arg1, %c0_i32_18 : i32
    %43 = arith.extui %42 : i1 to i32
    %c0_i32_19 = arith.constant 0 : i32
    %44 = arith.cmpi ne, %43, %c0_i32_19 : i32
    scf.if %44 {
      %c0_20 = arith.constant 0 : index
      %45 = memref.load %arg2[%c0_20] : memref<3xf32, #tpu.memory_space<smem>>
      %c1 = arith.constant 1 : index
      %46 = memref.load %arg2[%c1] : memref<3xf32, #tpu.memory_space<smem>>
      %c2 = arith.constant 2 : index
      %47 = memref.load %arg2[%c2] : memref<3xf32, #tpu.memory_space<smem>>
      %c0_21 = arith.constant 0 : index
      %c0_22 = arith.constant 0 : index
      %48 = vector.load %arg9[%c0_21, %c0_22] : memref<8x16xf32, #tpu.memory_space<vmem>>, vector<8x16xf32>
      %c0_23 = arith.constant 0 : index
      %c0_24 = arith.constant 0 : index
      %49 = vector.load %arg7[%c0_23, %c0_24] : memref<1x16xf32, #tpu.memory_space<vmem>>, vector<1x16xf32>
      %50 = vector.broadcast %49 : vector<1x16xf32> to vector<8x16xf32>
      %51 = arith.mulf %48, %50 : vector<8x16xf32>
      %cst_25 = arith.constant dense<0.000000e+00> : vector<8xf32>
      %52 = vector.multi_reduction <add>, %51, %cst_25 [1] : vector<8x16xf32> to vector<8xf32>
      %53 = vector.shape_cast %52 : vector<8xf32> to vector<8x1xf32>
      %c0_26 = arith.constant 0 : index
      %c0_27 = arith.constant 0 : index
      %c0_28 = arith.constant 0 : index
      %54 = vector.load %arg4[%c0_26, %c0_27, %c0_28] : memref<8x1x1xi32, #tpu.memory_space<vmem>>, vector<8x1x1xi32>
      %55 = vector.shape_cast %54 : vector<8x1x1xi32> to vector<8x1xi32>
      %56 = arith.sitofp %55 : vector<8x1xi32> to vector<8x1xf32>
      %57 = vector.broadcast %46 : f32 to vector<8x1xf32>
      %58 = arith.mulf %53, %57 : vector<8x1xf32>
      %59 = arith.mulf %47, %46 : f32
      %60 = arith.addf %59, %45 : f32
      %61 = vector.broadcast %60 : f32 to vector<8x1xf32>
      %62 = arith.mulf %56, %61 : vector<8x1xf32>
      %63 = arith.addf %58, %62 : vector<8x1xf32>
      %c0_29 = arith.constant 0 : index
      %c0_30 = arith.constant 0 : index
      %64 = vector.load %arg8[%c0_29, %c0_30] : memref<8x1xf32, #tpu.memory_space<vmem>>, vector<8x1xf32>
      tpu.vector_store %arg8[%c0_29, %c0_30], %63 {strides = array<i32>} : memref<8x1xf32, #tpu.memory_space<vmem>>, vector<8x1xf32>,
    } else {
    }
    return
  }
  func.func @transform_0(%arg0: i32, %arg1: i32, %arg2: memref<3xf32, #tpu.memory_space<smem>>) -> (i32, i32, i32) {
    %c0_i32 = arith.constant 0 : i32
    %c0_i32_0 = arith.constant 0 : i32
    return %arg0, %arg1, %c0_i32 : i32, i32, i32
  }
  func.func @transform_1(%arg0: i32, %arg1: i32, %arg2: memref<3xf32, #tpu.memory_space<smem>>) -> (i32, i32, i32) {
    %c0_i32 = arith.constant 0 : i32
    %c0_i32_0 = arith.constant 0 : i32
    %c0_i32_1 = arith.constant 0 : i32
    return %arg0, %c0_i32, %c0_i32_0 : i32, i32, i32
  }
  func.func @transform_2(%arg0: i32, %arg1: i32, %arg2: memref<3xf32, #tpu.memory_space<smem>>) -> (i32, i32) {
    %c0_i32 = arith.constant 0 : i32
    %c0_i32_0 = arith.constant 0 : i32
    %c0_i32_1 = arith.constant 0 : i32
    return %c0_i32, %c0_i32_0 : i32, i32
  }
  func.func @transform_3(%arg0: i32, %arg1: i32, %arg2: memref<3xf32, #tpu.memory_space<smem>>) -> (i32, i32) {
    %c0_i32 = arith.constant 0 : i32
    %c0_i32_0 = arith.constant 0 : i32
    %c0_i32_1 = arith.constant 0 : i32
    return %c0_i32, %c0_i32_0 : i32, i32
  }
  func.func @transform_4(%arg0: i32, %arg1: i32, %arg2: memref<3xf32, #tpu.memory_space<smem>>) -> (i32, i32) {
    %c0_i32 = arith.constant 0 : i32
    %c0_i32_0 = arith.constant 0 : i32
    %c0_i32_1 = arith.constant 0 : i32
    return %c0_i32, %c0_i32_0 : i32, i32
  }
  func.func @transform_5(%arg0: i32, %arg1: i32, %arg2: memref<3xf32, #tpu.memory_space<smem>>) -> (i32, i32) {
    %c0_i32 = arith.constant 0 : i32
    %c0_i32_0 = arith.constant 0 : i32
    return %arg0, %c0_i32 : i32, i32
  }
}

</mosaic_0001>

<bundles_post_ra>
// kernel: tpu_custom_call.1
= control target key start
LH: loop header
LB: loop body
LE: loop exit
PB: predicated region body
PF: predicated region fallthrough
CT: control target
= control target key end

     0   :  { %s1758_s0 = inlined_call_operand.vmem [shape: f32[3], index: 0, kind: input, shape index: {}]   ;;  %s1759_s1 = inlined_call_operand.hbm [shape: bf16[8,16,32], index: 1, kind: input, shape index: {}]   ;;  %s1760_s2 = inlined_call_operand.vmem [shape: s32[8,1,1], index: 2, kind: input, shape index: {}]   ;;  %s1761_s3 = inlined_call_operand.vmem [shape: bf16[32,16], index: 3, kind: input, shape index: {}]   ;;  %s1762_s4 = inlined_call_operand.vmem [shape: f32[1,16], index: 4, kind: input, shape index: {}]   ;;  %s1763_s5 = inlined_call_operand.vmem [shape: f32[1,16], index: 5, kind: input, shape index: {}]   ;;  %s1764_s6 = inlined_call_operand.vmem [shape: f32[8,1], index: 6, kind: output, shape index: {}]  }
   0x1   :  { %s11_s23 = sshll.u32 %s1758_s0, 4  ;;  %s12_s23 = int_to_ptr.vmem [resolvable:$true] %s11_s23 }
   0x2   :  { %s1175_s24 = scalar_lea.vmem %s12_s23, 16  ;;  %p1180_p1 = scmp.lt.s32.totalorder %s12_s23, %s12_s23 }
   0x3   :  { %p1176_p0 = scmp.ne.s32.totalorder %s12_s23, %s1175_s24  ;;  %p1181_p2 = scmp.lt.s32.totalorder %s1175_s24, %s1175_s24 }
   0x5   :  { %p1182_p3 = por %p1181_p2, %p1180_p1 }
   0x7   :  { %p1183_p4 = pnand %p1182_p3, %p1176_p0 }
   0x9   :  { %1186 = shalt.err (!%p1183_p4)  }
   0xa   :  { %s1213_s25 = smov [#allocation4]  }
   0xb   :  { %14 = dma.vmem_to_smem %s12_s23, 16, %s1213_s25, [#allocation3] }
   0xc   :  { %1209 = dma.done.wait [#allocation3], 16 }
   0xd   :  { %1210 = vsyncadd [#allocation3], 4294967280 }
   0xe   :  { %16 = sfence }
   0xf   :  { %17 = vsyncpa [#allocation6], 0  ;;  %s1214_s26 = smov [#allocation5]   ;;  %s1187_s0 = scalar_lea.hbm %s1759_s1, 1024 }
  0x10   :  { %s23_s27 = sshll.u32 %s1214_s26, 4  ;;  %p1188_p5 = scmp.ne.s32.totalorder %s1759_s1, %s1187_s0  ;;  %s24_s27 = int_to_ptr.vmem [resolvable:$true] %s23_s27 }
  0x11   :  { %p1191_p6 = scmp.lt.u32.totalorder %s1187_s0, %s1759_s1 }
  0x13   :  { %p1193_p7 = pnand %p1191_p6, %p1188_p5 }
  0x15   :  { %1196 = shalt.err (!%p1193_p7)
}
  0x16   :  { %s1197_s10 = scalar_lea.vmem %s24_s27, 1024  ;;  %p1202_p9 = scmp.lt.s32.totalorder %s24_s27, %s24_s27 }
  0x17   :  { %p1198_p8 = scmp.ne.s32.totalorder %s24_s27, %s1197_s10  ;;  %p1203_p10 = scmp.lt.s32.totalorder %s1197_s10, %s1197_s10 }
  0x19   :  { %p1204_p11 = por %p1203_p10, %p1202_p9 }
  0x1b   :  { %p1205_p12 = pnand %p1204_p11, %p1198_p8 }
  0x1d   :  { %1208 = shalt.err (!%p1205_p12)
}
  0x1e   :  { %s1215_s11 = smov 64   ;;  %s1216_s12 = smov 4  }
  0x1f   :  { %29 = dma.hbm_to_vmem [thread:$0]  %s1759_s1, 1024, %s24_s27, [#allocation6], %s1215_s11, %s1215_s11, %s1216_s12  }
  0x20   :  { %1211 = dma.done.wait [#allocation6], 1024  }
  0x21   :  { %1212 = vsyncadd [#allocation6], 4294966272  ;;  %v1217_v0 = vmov 0   ;;  %v553_v1 = vlaneseq  ;;  %v1101_v2 = vld [vmem:[%s1761_s3] sm:$0xff]   ;;  %v1102_v3 = vld [vmem:[%s1761_s3 + $0x8] sm:$0xff]   ;;  %vm127_vm0 = vcmask 261120  }
  0x22   :  { %1059 = vset.pattern.permute.xlu0 %v1217_v0  ;;  %1070 = vset.pattern.permute.xlu1 %v1217_v0  ;;  %v1103_v4 = vld [vmem:[#allocation5] sm:$0xff]   ;;  %v1105_v7 = vld [vmem:[#allocation5 + $0x8] sm:$0xff]   ;;  %v1107_v9 = vld [vmem:[#allocation5 + $0x10] sm:$0xff]   ;;  %v1218_v16 = vmov 0.0   ;;  %s1726_s11 = sld [smem:[#allocation4 + $0x1]]  ;;  %s1016_s12 = sld [smem:[#allocation4 + $0x2]] }
  0x23   :  { %1028 = vmatprep.subr.bf16.mxu0 %v1101_v2  ;;  %1048 = vmatprep.subr.bf16.mxu1 %v1101_v2  ;;  %v1104_v5 = vld [vmem:[#allocation5 + $0x20] sm:$0xff]   ;;  %v1276_v6 = vshrl.u32 %v553_v1, 7  ;;  %v1106_v8 = vld [vmem:[#allocation5 + $0x28] sm:$0xff]   ;;  %v1108_v10 = vld [vmem:[#allocation5 + $0x30] sm:$0xff]   ;;  %s846_s13 = sld [smem:[#allocation4]] }
  0x24   :  { %1029 = vmatpush3.bf16.msra.mxu0 %v1101_v2  ;;  %1050 = vmatpush3.bf16.msra.mxu1 %v1101_v2  ;;  %v991_v12 = vld [vmem:[%s1760_s2] ss:$0 sm:$0xff]  ;;  %v993_v13 = vld [vmem:[%s1760_s2 + $0x2] ss:$0 sm:$0xff]  ;;  %v992_v14 = vld [vmem:[%s1760_s2 + $0x1] ss:$0 sm:$0xff] }
  0x25   :  { %1766 = vst [vmem:[#allocation9_spill] sm:$0xff] %v1276_v6  ;;  %1030 = vmatprep.subr.bf16.mxu0 %v1102_v3  ;;  %1049 = vmatprep.subr.bf16.mxu1 %v1102_v3  ;;  %v555_v11 = vadd.s32 8, %v1276_v6  ;;  %vm600_vm1 = vcmp.lt.s32.totalorder %v1276_v6, %v991_v12  ;;  %vm604_vm3 = vcmp.lt.s32.totalorder %v1276_v6, %v993_v13  ;;  %v994_v15 = vld [vmem:[%s1760_s2 + $0x3] ss:$0 sm:$0xff]  ;;  %v995_v20 = vld [vmem:[%s1760_s2 + $0x4] ss:$0 sm:$0xff] }
  0x26   :  { %1032 = vmatprep.mubr.msk.bf16.mxu0 %vm127_vm0, %v1103_v4  ;;  %1040 = vmatprep.mubr.msk.bf16.mxu1 %vm127_vm0, %v1104_v5  ;;  %v999_v17 = vsel %vm600_vm1, 1.0, %v1218_v16  ;;  %v1003_v19 = vsel %vm604_vm3, 1.0, %v1218_v16  ;;  %vm602_vm5 = vcmp.lt.s32.totalorder %v1276_v6, %v992_v14  ;;  %v996_v23 = vld [vmem:[%s1760_s2 + $0x5] ss:$0 sm:$0xff]  ;;  %vm606_vm7 = vcmp.lt.s32.totalorder %v1276_v6, %v994_v15  ;;  %v997_v31 = vld [vmem:[%s1760_s2 + $0x6] ss:$0 sm:$0xff] }
  0x27   :  { %vm601_vm2 = vcmp.lt.s32.totalorder %v555_v11, %v991_v12  ;;  %vm605_vm4 = vcmp.lt.s32.totalorder %v555_v11, %v993_v13  ;;  %vm603_vm6 = vcmp.lt.s32.totalorder %v555_v11, %v992_v14  ;;  %v1109_v24 = vld [vmem:[#allocation5 + $0x18] sm:$0xff]   ;;  %v1001_v27 = vsel %vm602_vm5, 1.0, %v1218_v16 }
  0x28   :  { %1031 = vmatpush3.bf16.msra.mxu0 %v1102_v3  ;;  %1051 = vmatpush3.bf16.msra.mxu1 %v1102_v3  ;;  %v1000_v18 = vsel %vm601_vm2, 1.0, %v1218_v16  ;;  %v1004_v22 = vsel %vm605_vm4, 1.0, %v1218_v16  ;;  %v1110_v25 = vld [vmem:[#allocation5 + $0x38] sm:$0xff]   ;;  %v1002_v28 = vsel %vm603_vm6, 1.0, %v1218_v16  ;;  %vm607_vm8 = vcmp.lt.s32.totalorder %v555_v11, %v994_v15  ;;  %s879_s14 = smul.f32 %s1016_s12, %s1726_s11 }
  0x29   :  { %v1060_v21 = vpack.i.bf16 %v1000_v18, %v999_v17  ;;  %v1071_v26 = vpack.i.bf16 %v1004_v22, %v1003_v19  ;;  %v1065_v29 = vpack.i.bf16 %v1002_v28, %v1001_v27  ;;  %v1005_v30 = vsel %vm606_vm7, 1.0, %v1218_v16  ;;  %v998_v34 = vld [vmem:[%s1760_s2 + $0x7] ss:$0 sm:$0xff]  ;;  %v1325_v48 = vld [vmem:[%s1762_s4] ss:$0 sm:$0xff] }
  0x2a   :  { %vm608_vm9 = vcmp.lt.s32.totalorder %v1276_v6, %v995_v20  ;;  %v1006_v32 = vsel %vm607_vm8, 1.0, %v1218_v16  ;;  %vm609_vm10 = vcmp.lt.s32.totalorder %v555_v11, %v995_v20  ;;  %vm610_vm11 = vcmp.lt.s32.totalorder %v1276_v6, %v996_v23  ;;  %s880_s3 = sadd.f32 %s879_s14, %s846_s13 }
  0x2b   :  { %1033 = vmatmul.mubr.msk.bf16.vlgmr.msra.gmra.mrb[0].mxu0 %vm127_vm0, %v1105_v7  ;;  %1041 = vmatmul.mubr.msk.bf16.vlgmr.msra.gmra.mrb[0].mxu1 %vm127_vm0, %v1106_v8  ;;  %v1007_v33 = vsel %vm608_vm9, 1.0, %v1218_v16  ;;  %v1076_v35 = vpack.i.bf16 %v1006_v32, %v1005_v30  ;;  %v1008_v36 = vsel %vm609_vm10, 1.0, %v1218_v16  ;;  %vm611_vm12 = vcmp.lt.s32.totalorder %v555_v11, %v996_v23 }
  0x2c   :  { %1036 = vmatprep.mubr.msk.bf16.mxu0 %vm127_vm0, %v1107_v9  ;;  %1044 = vmatprep.mubr.msk.bf16.mxu1 %vm127_vm0, %v1108_v10  ;;  %v1009_v37 = vsel %vm610_vm11, 1.0, %v1218_v16  ;;  %v1010_v38 = vsel %vm611_vm12, 1.0, %v1218_v16  ;;  %vm612_vm13 = vcmp.lt.s32.totalorder %v1276_v6, %v997_v31  ;;  %vm613_vm14 = vcmp.lt.s32.totalorder %v555_v11, %v997_v31 }
  0x2d   :  { %1061 = vperm.xlu0 %1059, %v1060_v21   ;;  %1072 = vperm.xlu1 %1070, %v1071_v26   ;;  %v1081_v39 = vpack.i.bf16 %v1008_v36, %v1007_v33  ;;  %vm614_vm15 = vcmp.lt.s32.totalorder %v1276_v6, %v998_v34  ;;  %v1086_v40 = vpack.i.bf16 %v1010_v38, %v1009_v37  ;;  %v1011_v41 = vsel %vm612_vm13, 1.0, %v1218_v16 }
  0x2e   :  { %v1012_v42 = vsel %vm613_vm14, 1.0, %v1218_v16  ;;  %vm615_vm1 = vcmp.lt.s32.totalorder %v555_v11, %v998_v34  ;;  %v1013_v43 = vsel %vm614_vm15, 1.0, %v1218_v16 }
  0x2f   :  { %v1014_v44 = vsel %vm615_vm1, 1.0, %v1218_v16  ;;  %v1091_v45 = vpack.i.bf16 %v1012_v42, %v1011_v41 }
  0x30   :  { %v1096_v46 = vpack.i.bf16 %v1014_v44, %v1013_v43 }
  0x31   :  { %1066 = vperm.xlu0 %1059, %v1065_v29   ;;  %1077 = vperm.xlu1 %1070, %v1076_v35  }
  0x33   :  { %1037 = vmatmul.mubr.msk.bf16.gmra.mrb[4].mxu0 %vm127_vm0, %v1109_v24  ;;  %1045 = vmatmul.mubr.msk.bf16.gmra.mrb[4].mxu1 %vm127_vm0, %v1110_v25  ;;  %vm46_vm0 = vcmask 130048  }
  0x34   :  { %47 = vst.msk [vmem:[#allocation2] sm:$0xff] %vm46_vm0, %v1218_v16 }
  0x35   :  { %1082 = vperm.xlu0 %1059, %v1081_v39   ;;  %1087 = vperm.xlu1 %1070, %v1086_v40  }
  0x39   :  { %1092 = vperm.xlu0 %1059, %v1091_v45   ;;  %1097 = vperm.xlu1 %1070, %v1096_v46  }
  0xac   :  { %v1320_v47 = vpop.permute.xlu0 %1061  ;;  %v1327_v49 = vpop.permute.xlu1 %1072 }
  0xb0   :  { %v1338_v59 = vpop.permute.xlu0 %1066  ;;  %v1357_v11 = vpop.permute.xlu1 %1077 }
  0xb4   :  { %v1365_v17 = vpop.permute.xlu0 %1082 }
  0xfe   :  { %v1034_v50 = vpop.f32.mrb[0].mxu0  ;;  %v1042_v51 = vpop.f32.mrb[0].mxu1 }
  0xff   :  { %v1330_v52 = vadd.f32 %v1034_v50, %v1325_v48  ;;  %v186_v53 = vpop.f32.mrb[1].mxu0  ;;  %v218_v54 = vpop.f32.mrb[1].mxu1  ;;  %v1333_v55 = vadd.f32 %v1042_v51, %v1325_v48 }
 0x100   :  { %v1336_v56 = vadd.f32 %v1325_v48, %v186_v53  ;;  %v1035_v57 = vpop.f32.mrb[2].mxu0  ;;  %v1043_v58 = vpop.f32.mrb[2].mxu1  ;;  %v1343_v62 = vadd.f32 %v1325_v48, %v218_v54 }
 0x101   :  { %v299_v60 = vand.u32 2147483647, %v1330_v52  ;;  %v1346_v63 = vadd.f32 %v1035_v57, %v1325_v48  ;;  %v189_v0 = vpop.f32.mrb[3].mxu0  ;;  %v221_v1 = vpop.f32.mrb[3].mxu1  ;;  %v307_v2 = vand.u32 2147483647, %v1333_v55  ;;  %v1353_v5 = vadd.f32 %v1043_v58, %v1325_v48 }
 0x102   :  { %v297_v61 = vand.u32 2147483647, %v1336_v56  ;;  %v1350_v4 = vadd.f32 %v1325_v48, %v189_v0  ;;  %v305_v12 = vand.u32 2147483647, %v1343_v62  ;;  %v1362_v14 = vadd.f32 %v1325_v48, %v221_v1  ;;  %v1385_v51 = vpop.permute.xlu1 %1087  ;;  %v1393_v0 = vpop.permute.xlu0 %1092 }
 0x103   :  { %v315_v7 = vsub.f32 0.0, %v299_v60  ;;  %v300_v9 = vand.u32 2147483647, %v1346_v63  ;;  %v323_v18 = vsub.f32 0.0, %v307_v2  ;;  %v308_v24 = vand.u32 2147483647, %v1353_v5 }
 0x104   :  { %v313_v3 = vsub.f32 0.0, %v297_v61  ;;  %v298_v13 = vand.u32 2147483647, %v1350_v4  ;;  %v321_v35 = vsub.f32 0.0, %v305_v12  ;;  %v306_v37 = vand.u32 2147483647, %v1362_v14 }
 0x105   :  { %v316_v19 = vsub.f32 0.0, %v300_v9  ;;  %v333_v29 = vmul.f32 1.442695, %v315_v7  ;;  %v349_v44 = vmul.f32 1.442695, %v323_v18  ;;  %v324_v45 = vsub.f32 0.0, %v308_v24 }
 0x106   :  { %v329_v8 = vmul.f32 1.442695, %v313_v3  ;;  %v1038_v15 = vpop.f32.mrb[4].mxu0  ;;  %v1046_v20 = vpop.f32.mrb[4].mxu1  ;;  %v314_v25 = vsub.f32 0.0, %v298_v13  ;;  %v322_v60 = vsub.f32 0.0, %v306_v37  ;;  %vm265_vm3 = vcmp.ne.f32.partialorder %v1336_v56, %v1336_v56 }
 0x107   :  { %v202_v21 = vpop.f32.mrb[5].mxu0  ;;  %v1371_v26 = vadd.f32 %v1038_v15, %v1325_v48  ;;  %v234_v27 = vpop.f32.mrb[5].mxu1  ;;  %v335_v40 = vmul.f32 1.442695, %v316_v19  ;;  %v345_v58 = vmul.f32 1.442695, %v321_v35  ;;  %v1396_v1 = vadd.f32 %v1046_v20, %v1325_v48 }
 0x108   :  { %1111 = vpow2.f32 %v329_v8  ;;  %v1039_v28 = vpop.f32.mrb[6].mxu0  ;;  %v1047_v30 = vpop.f32.mrb[6].mxu1  ;;  %v331_v36 = vmul.f32 1.442695, %v314_v25  ;;  %v1378_v38 = vadd.f32 %v1325_v48, %v202_v21  ;;  %v1388_v54 = vadd.f32 %v1325_v48, %v234_v27 }
 0x109   :  { %v205_v31 = vpop.f32.mrb[7].mxu0  ;;  %v237_v39 = vpop.f32.mrb[7].mxu1  ;;  %v303_v41 = vand.u32 2147483647, %v1371_v26  ;;  %v1391_v57 = vadd.f32 %v1039_v28, %v1325_v48  ;;  %v351_v13 = vmul.f32 1.442695, %v324_v45  ;;  %v1416_v37 = vadd.f32 %v1047_v30, %v1325_v48 }
 0x10a   :  { %v301_v46 = vand.u32 2147483647, %v1378_v38  ;;  %1113 = vpow2.f32 %v331_v36  ;;  %v309_v2 = vand.u32 2147483647, %v1388_v54  ;;  %v1402_v12 = vadd.f32 %v1325_v48, %v205_v31 }
 0x10b   :  { %v319_v53 = vsub.f32 0.0, %v303_v41  ;;  %1115 = vpow2.f32 %v333_v29  ;;  %v304_v9 = vand.u32 2147483647, %v1391_v57  ;;  %v347_v20 = vmul.f32 1.442695, %v322_v60 }
 0x10c   :  { %v317_v61 = vsub.f32 0.0, %v301_v46  ;;  %1117 = vpow2.f32 %v335_v40  ;;  %v302_v24 = vand.u32 2147483647, %v1402_v12  ;;  %v311_v25 = vand.u32 2147483647, %v1396_v1 }
 0x10d   :  { %v341_v7 = vmul.f32 1.442695, %v319_v53  ;;  %1119 = vpow2.f32 %v349_v44  ;;  %v320_v21 = vsub.f32 0.0, %v304_v9  ;;  %v325_v27 = vsub.f32 0.0, %v309_v2 }
 0x10e   :  { %v337_v8 = vmul.f32 1.442695, %v317_v61  ;;  %1121 = vpow2.f32 %v345_v58  ;;  %v1411_v28 = vadd.f32 %v1325_v48, %v237_v39  ;;  %v318_v35 = vsub.f32 0.0, %v302_v24 }
 0x10f   :  { %v343_v31 = vmul.f32 1.442695, %v320_v21  ;;  %v327_v46 = vsub.f32 0.0, %v311_v25  ;;  %v353_v53 = vmul.f32 1.442695, %v325_v27  ;;  %vm266_vm5 = vcmp.ne.f32.partialorder %v1350_v4, %v1350_v4 }
 0x110   :  { %1123 = vpow2.f32 %v337_v8  ;;  %v339_v39 = vmul.f32 1.442695, %v318_v35  ;;  %v310_v58 = vand.u32 2147483647, %v1411_v28  ;;  %v312_v8 = vand.u32 2147483647, %v1416_v37 }
 0x111   :  { %1125 = vpow2.f32 %v341_v7  ;;  %v1435_v25 = vmul.f32 1.442695, %v327_v46  ;;  %vm267_vm8 = vcmp.ne.f32.partialorder %v1330_v52, %v1330_v52  ;;  %vm268_vm10 = vcmp.ne.f32.partialorder %v1346_v63, %v1346_v63 }
 0x112   :  { %v1406_v19 = vpop.eup %1111  ;;  %1127 = vpow2.f32 %v351_v13  ;;  %v326_v27 = vsub.f32 0.0, %v310_v58  ;;  %v1441_v43 = vsub.f32 0.0, %v312_v8  ;;  %vm269_vm11 = vcmp.ne.f32.partialorder %v1378_v38, %v1378_v38 }
 0x113   :  { %v361_v40 = vadd.f32 1.0, %v1406_v19  ;;  %1129 = vpow2.f32 %v343_v31  ;;  %v364_v48 = vmul.f32 -0.5, %v1406_v19  ;;  %v367_v21 = vand.u32 2147483647, %v1406_v19 }
 0x114   :  { %v1114_v45 = vpop.eup %1113  ;;  %1131 = vpow2.f32 %v347_v20  ;;  %v1453_v42 = vmul.f32 1.442695, %v326_v27  ;;  %vm271_vm14 = vcmp.ne.f32.partialorder %v1371_v26, %v1371_v26  ;;  %vm270_vm15 = vcmp.ne.f32.partialorder %v1402_v12, %v1402_v12 }
 0x115   :  { %v1422_v60 = vpop.eup %1115  ;;  %1133 = vpow2.f32 %v339_v39  ;;  %v370_v30 = vadd.f32 1.0, %v1114_v45  ;;  %v373_v9 = vmul.f32 -0.5, %v1114_v45  ;;  %v365_v39 = vadd.f32 1.0, %v364_v48 }
 0x116   :  { %v1426_v2 = vpop.eup %1117  ;;  %1135 = vlog2.f32 %v361_v40  ;;  %v379_v31 = vadd.f32 1.0, %v1422_v60  ;;  %v376_v18 = vand.u32 2147483647, %v1114_v45  ;;  %v382_v46 = vmul.f32 -0.5, %v1422_v60 }
 0x117   :  { %1137 = vlog2.f32 %v370_v30  ;;  %v1433_v24 = vpop.eup %1119  ;;  %v374_v40 = vadd.f32 1.0, %v373_v9  ;;  %v388_v15 = vadd.f32 1.0, %v1426_v2  ;;  %vm1445_vm2 = vcmp.lt.f32.partialorder %v367_v21, 0.0004427343 }
 0x118   :  { %1139 = vpow2.f32 %v353_v53  ;;  %v1438_v35 = vpop.eup %1121  ;;  %v385_v48 = vand.u32 2147483647, %v1422_v60  ;;  %v391_v9 = vmul.f32 -0.5, %v1426_v2  ;;  %v366_v21 = vmul.f32 %v1406_v19, %v365_v39 }
 0x119   :  { %1141 = vlog2.f32 %v379_v31  ;;  %v394_v31 = vand.u32 2147483647, %v1426_v2  ;;  %v375_v32 = vmul.f32 %v1114_v45, %v374_v40  ;;  %vm1461_vm4 = vcmp.lt.f32.partialorder %v376_v18, 0.0004427343 }
 0x11a   :  { %v1124_v3 = vpop.eup %1123  ;;  %1143 = vlog2.f32 %v388_v15  ;;  %v383_v27 = vadd.f32 1.0, %v382_v46  ;;  %vm1469_vm6 = vcmp.lt.f32.partialorder %v385_v48, 0.0004427343  ;;  %v392_v19 = vadd.f32 1.0, %v391_v9 }
 0x11b   :  { %v1126_v34 = vpop.eup %1125  ;;  %v397_v58 = vadd.f32 1.0, %v1124_v3  ;;  %v400_v8 = vmul.f32 -0.5, %v1124_v3  ;;  %v403_v15 = vand.u32 2147483647, %v1124_v3  ;;  %vm1475_vm7 = vcmp.lt.f32.partialorder %v394_v31, 0.0004427343 }
 0x11c   :  { %v1451_v41 = vpop.eup %1127  ;;  %v415_v30 = vadd.f32 1.0, %v1126_v34  ;;  %v418_v7 = vmul.f32 -0.5, %v1126_v34  ;;  %v421_v9 = vand.u32 2147483647, %v1126_v34  ;;  %v393_v53 = vmul.f32 %v1426_v2, %v392_v19 }
 0x11d   :  { %v1456_v50 = vpop.eup %1129  ;;  %1145 = vlog2.f32 %v397_v58  ;;  %v401_v40 = vadd.f32 1.0, %v400_v8  ;;  %vm1485_vm9 = vcmp.lt.f32.partialorder %v403_v15, 0.0004427343  ;;  %vm272_vm1 = vcmp.ne.f32.partialorder %v1391_v57, %v1391_v57 }
 0x11e   :  { %v1465_v33 = vpop.eup %1131  ;;  %v424_v18 = vadd.f32 1.0, %v1456_v50  ;;  %v427_v45 = vmul.f32 -0.5, %v1456_v50  ;;  %1147 = vlog2.f32 %v415_v30  ;;  %v419_v48 = vadd.f32 1.0, %v418_v7 }
 0x11f   :  { %v1134_v22 = vpop.eup %1133  ;;  %v384_v7 = vmul.f32 %v1422_v60, %v383_v27  ;;  %vm1501_vm12 = vcmp.lt.f32.partialorder %v421_v9, 0.0004427343  ;;  %v1783_v9 = vmax.f32 %v1330_v52, 0.0 }
 0x120   :  { %v1136_v39 = vpop.eup %1135  ;;  %v406_v58 = vadd.f32 1.0, %v1134_v22  ;;  %v409_v13 = vmul.f32 -0.5, %v1134_v22  ;;  %1149 = vlog2.f32 %v424_v18  ;;  %v412_v61 = vand.u32 2147483647, %v1134_v22 }
 0x121   :  { %v1138_v46 = vpop.eup %1137  ;;  %v363_v10 = vmul.f32 0.6931472, %v1136_v39  ;;  %v428_v30 = vadd.f32 1.0, %v427_v45  ;;  %v420_v6 = vmul.f32 %v1126_v34, %v419_v48  ;;  %v433_v34 = vadd.f32 1.0, %v1438_v35 }
 0x122   :  { %v1481_v16 = vpop.eup %1139  ;;  %v372_v29 = vmul.f32 0.6931472, %v1138_v46  ;;  %1151 = vlog2.f32 %v406_v58  ;;  %v410_v8 = vadd.f32 1.0, %v409_v13  ;;  %v1777_v13 = vmax.f32 %v1336_v56, 0.0 }
 0x123   :  { %v369_v31 = vsel %vm1445_vm2, %v366_v21, %v363_v10  ;;  %v1142_v18 = vpop.eup %1141  ;;  %v402_v10 = vmul.f32 %v1124_v3, %v401_v40  ;;  %v1778_v21 = vmax.f32 %v1350_v4, 0.0  ;;  %vm1510_vm13 = vcmp.lt.f32.partialorder %v412_v61, 0.0004427343 }
 0x124   :  { %v378_v39 = vsel %vm1461_vm4, %v375_v32, %v372_v29  ;;  %v505_v58 = vadd.f32 %v369_v31, %v1777_v13  ;;  %v381_v46 = vmul.f32 0.6931472, %v1142_v18  ;;  %v430_v32 = vand.u32 2147483647, %v1456_v50  ;;  %v1144_v29 = vpop.eup %1143 }
 0x125   :  { %v506_v15 = vadd.f32 %v378_v39, %v1778_v21  ;;  %v411_v3 = vmul.f32 %v1134_v22, %v410_v8  ;;  %v429_v27 = vmul.f32 %v1456_v50, %v428_v30  ;;  %1153 = vlog2.f32 %v433_v34 }
 0x126   :  { %v521_v20 = vsel %vm265_vm3, %v1336_v56, %v505_v58  ;;  %v387_v48 = vsel %vm1469_vm6, %v384_v7, %v381_v46  ;;  %v390_v56 = vmul.f32 0.6931472, %v1144_v29  ;;  %v1784_v50 = vunpack.i.l.bf16 %v1320_v47 }
 0x127   :  { %v1146_v19 = vpop.eup %1145  ;;  %v522_v45 = vsel %vm266_vm5, %v1350_v4, %v506_v15  ;;  %v975_v40 = vadd.f32 -0.6931472, %v521_v20  ;;  %v507_v8 = vadd.f32 %v387_v48, %v1783_v9  ;;  %vm1534_vm2 = vcmp.lt.f32.partialorder %v430_v32, 0.0004427343 }
 0x128   :  { %v976_v22 = vadd.f32 -0.6931472, %v522_v45  ;;  %v399_v61 = vmul.f32 0.6931472, %v1146_v19  ;;  %v396_v4 = vsel %vm1475_vm7, %v393_v53, %v390_v56  ;;  %v436_v7 = vmul.f32 -0.5, %v1438_v35  ;;  %v1148_v30 = vpop.eup %1147 }
 0x129   :  { %v728_v31 = vmul.f32 %v1784_v50, %v975_v40  ;;  %v1787_v18 = vunpack.i.h.bf16 %v1320_v47  ;;  %v1788_v58 = vmax.f32 %v1346_v63, 0.0  ;;  %v523_v53 = vsel %vm267_vm8, %v1330_v52, %v507_v8 }
 0x12a   :  { %v405_v13 = vsel %vm1485_vm9, %v402_v10, %v399_v61  ;;  %v1150_v21 = vpop.eup %1149  ;;  %v1789_v15 = vmax.f32 %v1378_v38, 0.0  ;;  %v977_v32 = vadd.f32 -0.6931472, %v523_v53  ;;  %v417_v29 = vmul.f32 0.6931472, %v1148_v30 }
 0x12b   :  { %v729_v39 = vmul.f32 %v1787_v18, %v976_v22  ;;  %v508_v44 = vadd.f32 %v396_v4, %v1788_v58  ;;  %v439_v47 = vand.u32 2147483647, %v1438_v35  ;;  %v746_v36 = vsel %vm46_vm0, %v728_v31, 0.0 }
 0x12c   :  { %v509_v46 = vadd.f32 %v405_v13, %v1789_v15  ;;  %v1152_v20 = vpop.eup %1151  ;;  %v426_v19 = vmul.f32 0.6931472, %v1150_v21  ;;  %v1790_v22 = vunpack.i.l.bf16 %v1338_v59  ;;  %v423_v9 = vsel %vm1501_vm12, %v420_v6, %v417_v29 }
 0x12d   :  { %v747_v10 = vsel %vm46_vm0, %v729_v39, 0.0  ;;  %v524_v34 = vsel %vm268_vm10, %v1346_v63, %v508_v44  ;;  %v408_v45 = vmul.f32 0.6931472, %v1152_v20  ;;  %v1791_v31 = vunpack.i.h.bf16 %v1338_v59 }
 0x12e   :  { %v748_v52 = vadd.f32 %v747_v10, %v746_v36  ;;  %v525_v40 = vsel %vm269_vm11, %v1378_v38, %v509_v46  ;;  %v978_v48 = vadd.f32 -0.6931472, %v524_v34  ;;  %v730_v61 = vmul.f32 %v1790_v22, %v977_v32 }
 0x12f   :  { %v979_v56 = vadd.f32 -0.6931472, %v525_v40  ;;  %v432_v8 = vsel %vm1534_vm2, %v429_v27, %v426_v19  ;;  %v414_v50 = vsel %vm1510_vm13, %v411_v3, %v408_v45  ;;  %v1792_v38 = vmax.f32 %v1371_v26, 0.0  ;;  %v1154_v44 = vpop.eup %1153 }
 0x130   :  { %v749_v63 = vrot.slane %v748_v52, 4  ;;  %v731_v4 = vmul.f32 %v1791_v31, %v978_v48  ;;  %v1793_v18 = vmax.f32 %v1402_v12, 0.0  ;;  %v1794_v13 = vunpack.i.l.bf16 %v1327_v49 }
 0x131   :  { %v511_v30 = vadd.f32 %v423_v9, %v1792_v38  ;;  %v1795_v6 = vmax.f32 %v1391_v57, 0.0  ;;  %v437_v27 = vadd.f32 1.0, %v436_v7  ;;  %v755_v2 = vsel %vm46_vm0, %v730_v61, 0.0 }
 0x132   :  { %v510_v39 = vadd.f32 %v414_v50, %v1793_v18  ;;  %v732_v60 = vmul.f32 %v1794_v13, %v979_v56  ;;  %v750_v58 = vadd.f32 %v749_v63, %v748_v52  ;;  %v756_v3 = vsel %vm46_vm0, %v731_v4, 0.0 }
 0x133   :  { %v512_v23 = vadd.f32 %v432_v8, %v1795_v6  ;;  %v527_v59 = vsel %vm271_vm14, %v1371_v26, %v511_v30  ;;  %v757_v21 = vadd.f32 %v756_v3, %v755_v2  ;;  %vm1594_vm3 = vcmp.lt.f32.partialorder %v439_v47, 0.0004427343 }
 0x134   :  { %v526_v53 = vsel %vm270_vm15, %v1402_v12, %v510_v39  ;;  %v751_v46 = vrot.slane %v750_v58, 2  ;;  %v981_v29 = vadd.f32 -0.6931472, %v527_v59  ;;  %v442_v26 = vadd.f32 1.0, %v1465_v33 }
 0x135   :  { %v528_v7 = vsel %vm272_vm1, %v1391_v57, %v512_v23  ;;  %v980_v32 = vadd.f32 -0.6931472, %v526_v53  ;;  %v758_v20 = vrot.slane %v757_v21, 4  ;;  %v435_v10 = vmul.f32 0.6931472, %v1154_v44 }
 0x136   :  { %v982_v36 = vadd.f32 -0.6931472, %v528_v7  ;;  %v438_v12 = vmul.f32 %v1438_v35, %v437_v27  ;;  %v752_v34 = vadd.f32 %v751_v46, %v750_v58  ;;  %v1798_v19 = vunpack.i.h.bf16 %v1327_v49 }
 0x137   :  { %vm826_vm4 = vcmask 1041409   ;;  %v1799_v57 = vunpack.i.l.bf16 %v1357_v11  ;;  %1155 = vlog2.f32 %v442_v26  ;;  %v759_v45 = vadd.f32 %v758_v20, %v757_v21 }
 0x138   :  { %v733_v52 = vmul.f32 %v1798_v19, %v980_v32  ;;  %1157 = vpow2.f32 %v1453_v42  ;;  %v1800_v40 = vunpack.i.h.bf16 %v1357_v11  ;;  %v441_v56 = vsel %vm1594_vm3, %v438_v12, %v435_v10 }
 0x139   :  { %v734_v47 = vmul.f32 %v1799_v57, %v981_v29  ;;  %v753_v22 = vrot.slane %v752_v34, 1  ;;  %v764_v35 = vsel %vm46_vm0, %v732_v60, 0.0  ;;  %v445_v61 = vmul.f32 -0.5, %v1465_v33 }
 0x13a   :  { %v735_v48 = vmul.f32 %v1800_v40, %v982_v36  ;;  %v765_v49 = vsel %vm46_vm0, %v733_v52, 0.0  ;;  %v760_v8 = vrot.slane %v759_v45, 2  ;;  %v259_v50 = vmax.f32 %v1333_v55, 0.0 }
 0x13b   :  { %v766_v9 = vadd.f32 %v765_v49, %v764_v35  ;;  %v773_v63 = vsel %vm46_vm0, %v734_v47, 0.0  ;;  %v1801_v31 = vmax.f32 %v1343_v62, 0.0  ;;  %v1094_v38 = vunpack.i.l.bf16 %v1393_v0 }
 0x13c   :  { %v774_v42 = vsel %vm46_vm0, %v735_v48, 0.0  ;;  %1159 = vpow2.f32 %v1435_v25  ;;  %v359_v30 = vmul.f32 1.442695, %v1441_v43  ;;  %v761_v39 = vadd.f32 %v760_v8, %v759_v45 }
 0x13d   :  { %v775_v11 = vadd.f32 %v774_v42, %v773_v63  ;;  %v513_v4 = vadd.f32 %v441_v56, %v1801_v31  ;;  %v767_v18 = vrot.slane %v766_v9, 4  ;;  %vm828_vm5 = vcmask 1042434  }
 0x13e   :  { %vm273_vm6 = vcmp.ne.f32.partialorder %v1343_v62, %v1343_v62  ;;  %v446_v60 = vadd.f32 1.0, %v445_v61  ;;  %v451_v6 = vadd.f32 1.0, %v1433_v24  ;;  %v754_v23 = vadd.f32 %v753_v22, %v752_v34 }
 0x13f   :  { %v776_v13 = vrot.slane %v775_v11, 4  ;;  %v768_v27 = vadd.f32 %v767_v18, %v766_v9  ;;  %v762_v58 = vrot.slane %v761_v39, 1  ;;  %vm830_vm7 = vcmask 1043459  }
 0x140   :  { %v448_v2 = vand.u32 2147483647, %v1465_v33  ;;  %v529_v25 = vsel %vm273_vm6, %v1343_v62, %v513_v4  ;;  %1161 = vlog2.f32 %v451_v6  ;;  %v460_v43 = vadd.f32 1.0, %v1451_v41 }
 0x141   :  { %v777_v3 = vadd.f32 %v776_v13, %v775_v11  ;;  %v260_v59 = vmax.f32 %v1353_v5, 0.0  ;;  %1163 = vpow2.f32 %v359_v30  ;;  %v769_v44 = vrot.slane %v768_v27, 2  ;;  %v1156_v21 = vpop.eup %1155 }
 0x142   :  { %v763_v53 = vadd.f32 %v762_v58, %v761_v39  ;;  %v447_v15 = vmul.f32 %v1465_v33, %v446_v60  ;;  %v454_v46 = vmul.f32 -0.5, %v1433_v24  ;;  %1165 = vlog2.f32 %v460_v43  ;;  %v1629_v32 = vpop.eup %1157 }
 0x143   :  { %v778_v7 = vrot.slane %v777_v3, 2  ;;  %v770_v29 = vadd.f32 %v769_v44, %v768_v27  ;;  %v444_v26 = vmul.f32 0.6931472, %v1156_v21  ;;  %v983_v20 = vadd.f32 -0.6931472, %v529_v25 }
 0x144   :  { %v827_v62 = vsel %vm826_vm4, %v763_v53, %v754_v23  ;;  %v258_v36 = vmax.f32 %v1362_v14, 0.0  ;;  %vm449_vm8 = vcmp.lt.f32.partialorder %v448_v2, 0.0004427343  ;;  %v463_v12 = vmul.f32 -0.5, %v1451_v41 }
 0x145   :  { %v779_v10 = vadd.f32 %v778_v7, %v777_v3  ;;  %v261_v34 = vmax.f32 %v1388_v54, 0.0  ;;  %v771_v19 = vrot.slane %v770_v29, 1  ;;  %v450_v33 = vsel %vm449_vm8, %v447_v15, %v444_v26 }
 0x146   :  { %v469_v52 = vadd.f32 1.0, %v1481_v16  ;;  %vm274_vm9 = vcmp.ne.f32.partialorder %v1362_v14, %v1362_v14  ;;  %v514_v47 = vadd.f32 %v450_v33, %v258_v36  ;;  %v457_v45 = vand.u32 2147483647, %v1433_v24  ;;  %v1639_v40 = vpop.eup %1159 }
 0x147   :  { %v780_v57 = vrot.slane %v779_v10, 1  ;;  %v772_v48 = vadd.f32 %v771_v19, %v770_v29  ;;  %v1802_v56 = vunpack.i.l.bf16 %v1365_v17  ;;  %v455_v35 = vadd.f32 1.0, %v454_v46 }
 0x148   :  { %1167 = vlog2.f32 %v469_v52  ;;  %v530_v61 = vsel %vm274_vm9, %v1362_v14, %v514_v47  ;;  %v464_v9 = vadd.f32 1.0, %v463_v12  ;;  %v478_v8 = vadd.f32 1.0, %v1629_v32 }
 0x149   :  { %v736_v22 = vmul.f32 %v1802_v56, %v983_v20  ;;  %v781_v49 = vadd.f32 %v780_v57, %v779_v10  ;;  %v829_v63 = vsel %vm828_vm5, %v772_v48, %v827_v62  ;;  %v984_v42 = vadd.f32 -0.6931472, %v530_v61 }
 0x14a   :  { %vm275_vm10 = vcmp.ne.f32.partialorder %v1333_v55, %v1333_v55  ;;  %v472_v11 = vmul.f32 -0.5, %v1481_v16  ;;  %v1162_v31 = vpop.eup %1161  ;;  %vm276_vm11 = vcmp.ne.f32.partialorder %v1353_v5, %v1353_v5  ;;  %v466_v14 = vand.u32 2147483647, %v1451_v41 }
 0x14b   :  { %v1650_v4 = vsel %vm830_vm7, %v781_v49, %v829_v63  ;;  %1169 = vlog2.f32 %v478_v8  ;;  %v1655_v30 = vpop.eup %1163  ;;  %v1803_v18 = vunpack.i.h.bf16 %v1365_v17  ;;  %v453_v13 = vmul.f32 0.6931472, %v1162_v31 }
 0x14c   :  { %v456_v60 = vmul.f32 %v1433_v24, %v455_v35  ;;  %v481_v6 = vmul.f32 -0.5, %v1629_v32  ;;  %v1166_v23 = vpop.eup %1165  ;;  %v782_v27 = vsel %vm46_vm0, %v736_v22, 0.0  ;;  %vm458_vm12 = vcmp.lt.f32.partialorder %v457_v45, 0.0004427343 }
 0x14d   :  { %v737_v39 = vmul.f32 %v1803_v18, %v984_v42  ;;  %v465_v58 = vmul.f32 %v1451_v41, %v464_v9  ;;  %v487_v2 = vadd.f32 1.0, %v1639_v40  ;;  %v462_v43 = vmul.f32 0.6931472, %v1166_v23 }
 0x14e   :  { %v459_v25 = vsel %vm458_vm12, %v456_v60, %v453_v13  ;;  %v473_v44 = vadd.f32 1.0, %v472_v11  ;;  %vm467_vm13 = vcmp.lt.f32.partialorder %v466_v14, 0.0004427343  ;;  %v475_v21 = vand.u32 2147483647, %v1481_v16 }
 0x14f   :  { %v783_v3 = vsel %vm46_vm0, %v737_v39, 0.0  ;;  %v515_v24 = vadd.f32 %v459_v25, %v259_v50  ;;  %1171 = vlog2.f32 %v487_v2  ;;  %v468_v53 = vsel %vm467_vm13, %v465_v58, %v462_v43  ;;  %v1098_v25 = vpop.permute.xlu1 %1097 }
 0x150   :  { %v784_v17 = vadd.f32 %v783_v3, %v782_v27  ;;  %v482_v7 = vadd.f32 1.0, %v481_v6  ;;  %v496_v15 = vadd.f32 1.0, %v1655_v30  ;;  %v516_v46 = vadd.f32 %v468_v53, %v260_v59 }
 0x151   :  { %v531_v29 = vsel %vm275_vm10, %v1333_v55, %v515_v24  ;;  %v484_v62 = vand.u32 2147483647, %v1629_v32  ;;  %vm832_vm14 = vcmask 1044484   ;;  %v474_v20 = vmul.f32 %v1481_v16, %v473_v44 }
 0x152   :  { %v785_v41 = vrot.slane %v784_v17, 4  ;;  %v1168_v26 = vpop.eup %1167  ;;  %v985_v50 = vadd.f32 -0.6931472, %v531_v29  ;;  %v490_v36 = vmul.f32 -0.5, %v1639_v40  ;;  %1173 = vlog2.f32 %v496_v15 }
 0x153   :  { %v532_v59 = vsel %vm276_vm11, %v1353_v5, %v516_v46  ;;  %v471_v12 = vmul.f32 0.6931472, %v1168_v26  ;;  %v499_v19 = vmul.f32 -0.5, %v1655_v30  ;;  %v262_v55 = vmax.f32 %v1411_v28, 0.0 }
 0x154   :  { %v786_v10 = vadd.f32 %v785_v41, %v784_v17  ;;  %v986_v33 = vadd.f32 -0.6931472, %v532_v59  ;;  %v1804_v52 = vunpack.i.l.bf16 %v1385_v51  ;;  %vm476_vm15 = vcmp.lt.f32.partialorder %v475_v21, 0.0004427343 }
 0x155   :  { %v1170_v16 = vpop.eup %1169  ;;  %vm277_vm1 = vcmp.ne.f32.partialorder %v1388_v54, %v1388_v54  ;;  %v477_v45 = vsel %vm476_vm15, %v474_v20, %v471_v12  ;;  %v483_v48 = vmul.f32 %v1629_v32, %v482_v7  ;;  %v1805_v5 = vunpack.i.h.bf16 %v1385_v51 }
 0x156   :  { %v738_v57 = vmul.f32 %v1804_v52, %v985_v50  ;;  %v787_v47 = vrot.slane %v786_v10, 2  ;;  %v480_v22 = vmul.f32 0.6931472, %v1170_v16  ;;  %v517_v35 = vadd.f32 %v477_v45, %v261_v34 }
 0x157   :  { %v739_v56 = vmul.f32 %v1805_v5, %v986_v33  ;;  %v491_v49 = vadd.f32 1.0, %v490_v36  ;;  %vm485_vm2 = vcmp.lt.f32.partialorder %v484_v62, 0.0004427343  ;;  %v493_v9 = vand.u32 2147483647, %v1639_v40 }
 0x158   :  { %v788_v61 = vadd.f32 %v787_v47, %v786_v10  ;;  %v500_v8 = vadd.f32 1.0, %v499_v19  ;;  %v791_v63 = vsel %vm46_vm0, %v738_v57, 0.0  ;;  %v486_v11 = vsel %vm485_vm2, %v483_v48, %v480_v22 }
 0x159   :  { %v792_v42 = vsel %vm46_vm0, %v739_v56, 0.0  ;;  %v533_v32 = vsel %vm277_vm1, %v1388_v54, %v517_v35  ;;  %v1172_v31 = vpop.eup %1171  ;;  %v518_v18 = vadd.f32 %v486_v11, %v262_v55  ;;  %vm278_vm3 = vcmp.ne.f32.partialorder %v1411_v28, %v1411_v28  ;;  %v1017_v11 = vld [vmem:[%s1763_s5] ss:$0 sm:$0xff] }
 0x15a   :  { %v789_v51 = vrot.slane %v788_v61, 1  ;;  %v793_v14 = vadd.f32 %v792_v42, %v791_v63  ;;  %v987_v39 = vadd.f32 -0.6931472, %v533_v32  ;;  %v489_v34 = vmul.f32 0.6931472, %v1172_v31 }
 0x15b   :  { %v492_v13 = vmul.f32 %v1639_v40, %v491_v49  ;;  %v502_v60 = vand.u32 2147483647, %v1655_v30  ;;  %v534_v27 = vsel %vm278_vm3, %v1411_v28, %v518_v18  ;;  %vm494_vm4 = vcmp.lt.f32.partialorder %v493_v9, 0.0004427343  ;;  %v744_v9 = vld [vmem:[#allocation2] sm:$0xff] }
 0x15c   :  { %v790_v6 = vadd.f32 %v789_v51, %v788_v61  ;;  %v794_v23 = vrot.slane %v793_v14, 4  ;;  %v1174_v58 = vpop.eup %1173  ;;  %v263_v54 = vmax.f32 %v1396_v1, 0.0  ;;  %v988_v2 = vadd.f32 -0.6931472, %v534_v27  ;;  %v862_v18 = vld [vmem:[%s1760_s2 + $0x1] sm:$0x1] }
 0x15d   :  { %v740_v3 = vmul.f32 %v1094_v38, %v987_v39  ;;  %v495_v43 = vsel %vm494_vm4, %v492_v13, %v489_v34  ;;  %v498_v17 = vmul.f32 0.6931472, %v1174_v58  ;;  %v501_v24 = vmul.f32 %v1655_v30, %v500_v8  ;;  %v863_v39 = vld [vmem:[%s1760_s2 + $0x2] sm:$0x1]  ;;  %v864_v34 = vld [vmem:[%s1760_s2 + $0x3] sm:$0x1] }
 0x15e   :  { %v833_v44 = vsel %vm832_vm14, %v790_v6, %v1650_v4  ;;  %v795_v40 = vadd.f32 %v794_v23, %v793_v14  ;;  %v264_v53 = vmax.f32 %v1416_v37, 0.0  ;;  %v1806_v28 = vunpack.i.h.bf16 %v1393_v0  ;;  %v861_v14 = vld [vmem:[%s1760_s2] sm:$0x1]  ;;  %v865_v13 = vld [vmem:[%s1760_s2 + $0x4] sm:$0x1] }
 0x15f   :  { %vm503_vm5 = vcmp.lt.f32.partialorder %v502_v60, 0.0004427343  ;;  %v519_v7 = vadd.f32 %v495_v43, %v263_v54  ;;  %v1099_v41 = vunpack.i.l.bf16 %v1098_v25  ;;  %vm279_vm6 = vcmp.ne.f32.partialorder %v1396_v1, %v1396_v1  ;;  %v866_v60 = vld [vmem:[%s1760_s2 + $0x5] sm:$0x1]  ;;  %v867_v6 = vld [vmem:[%s1760_s2 + $0x6] sm:$0x1] }
 0x160   :  { %v741_v21 = vmul.f32 %v1806_v28, %v988_v2  ;;  %v796_v15 = vrot.slane %v795_v40, 2  ;;  %v504_v38 = vsel %vm503_vm5, %v501_v24, %v498_v17  ;;  %v800_v46 = vsel %vm46_vm0, %v740_v3, 0.0  ;;  %v868_v23 = vld [vmem:[%s1760_s2 + $0x7] sm:$0x1] }
 0x161   :  { %v520_v29 = vadd.f32 %v504_v38, %v264_v53  ;;  %v535_v30 = vsel %vm279_vm6, %v1396_v1, %v519_v7  ;;  %vm280_vm7 = vcmp.ne.f32.partialorder %v1416_v37, %v1416_v37  ;;  %v1100_v50 = vunpack.i.h.bf16 %v1098_v25 }
 0x162   :  { %v801_v4 = vsel %vm46_vm0, %v741_v21, 0.0  ;;  %v797_v62 = vadd.f32 %v796_v15, %v795_v40  ;;  %v989_v0 = vadd.f32 -0.6931472, %v535_v30  ;;  %vm834_vm8 = vcmask 1045509  }
 0x163   :  { %v802_v26 = vadd.f32 %v801_v4, %v800_v46  ;;  %v536_v20 = vsel %vm280_vm7, %v1416_v37, %v520_v29  ;;  %vm836_vm9 = vcmask 1046534   ;;  %vm838_vm10 = vcmask 1047559  }
 0x164   :  { %v798_v36 = vrot.slane %v797_v62, 1  ;;  %v990_v59 = vadd.f32 -0.6931472, %v536_v20  ;;  %v742_v12 = vmul.f32 %v1099_v41, %v989_v0  ;;  %v869_v27 = vcvt.s32.f32 %v861_v14  ;;  %v1807_v0 = vld [vmem:[#allocation9_spill] sm:$0xff] }
 0x165   :  { %v803_v10 = vrot.slane %v802_v26, 4  ;;  %v870_v58 = vcvt.s32.f32 %v862_v18  ;;  %v871_v54 = vcvt.s32.f32 %v863_v39  ;;  %v872_v2 = vcvt.s32.f32 %v864_v34 }
 0x166   :  { %v799_v19 = vadd.f32 %v798_v36, %v797_v62  ;;  %v743_v33 = vmul.f32 %v1100_v50, %v990_v59  ;;  %v809_v1 = vsel %vm46_vm0, %v742_v12, 0.0  ;;  %v873_v3 = vcvt.s32.f32 %v865_v13 }
 0x167   :  { %v804_v55 = vadd.f32 %v803_v10, %v802_v26  ;;  %v881_v25 = vstv %s880_s3  ;;  %v874_v43 = vcvt.s32.f32 %v866_v60  ;;  %v876_v40 = vcvt.s32.f32 %v868_v23 }
 0x168   :  { %v835_v52 = vsel %vm834_vm8, %v799_v19, %v833_v44  ;;  %v810_v16 = vsel %vm46_vm0, %v743_v33, 0.0  ;;  %v875_v44 = vcvt.s32.f32 %v867_v6  ;;  %v1219_v17 = vmov 1966171168  }
 0x169   :  { %v805_v57 = vrot.slane %v804_v55, 2  ;;  %v811_v47 = vadd.f32 %v810_v16, %v809_v1  ;;  %v903_v24 = vunpack.c.l.s4 %v1219_v17  ;;  %v882_v53 = vmul.f32 %v881_v25, %v869_v27 }
 0x16a   :  { %v883_v28 = vmul.f32 %v881_v25, %v870_v58  ;;  %v884_v21 = vmul.f32 %v881_v25, %v871_v54  ;;  %v885_v7 = vmul.f32 %v881_v25, %v872_v2  ;;  %v886_v15 = vmul.f32 %v881_v25, %v873_v3 }
 0x16b   :  { %v806_v45 = vadd.f32 %v805_v57, %v804_v55  ;;  %v812_v48 = vrot.slane %v811_v47, 4  ;;  %v887_v41 = vmul.f32 %v881_v25, %v874_v43  ;;  %v888_v38 = vmul.f32 %v881_v25, %v875_v44 }
 0x16c   :  { %v889_v46 = vmul.f32 %v881_v25, %v876_v40  ;;  %v904_v4 = vunpack.c.0.s8 %v903_v24  ;;  %v898_v29 = vcombine.low %v882_v53, %v883_v28  ;;  %v899_v30 = vcombine.low %v884_v21, %v885_v7 }
 0x16d   :  { %v807_v5 = vrot.slane %v806_v45, 1  ;;  %v813_v37 = vadd.f32 %v812_v48, %v811_v47  ;;  %v900_v62 = vcombine.low %v886_v15, %v887_v41 }
 0x16e   :  { %v901_v26 = vcombine.low %v888_v38, %v889_v46  ;;  %v907_v50 = vsub.s32 %v904_v4, %v1807_v0 }
 0x16f   :  { %v808_v56 = vadd.f32 %v807_v5, %v806_v45  ;;  %v814_v22 = vrot.slane %v813_v37, 2 }
 0x170   :  { %v908_v20 = vrot.slane %v898_v29, %v907_v50  ;;  %v915_v36 = vrot.slane %v899_v30, %v907_v50  ;;  %v922_v10 = vrot.slane %v900_v62, %v907_v50  ;;  %v929_v59 = vrot.slane %v901_v26, %v907_v50 }
 0x171   :  { %v837_v35 = vsel %vm836_vm9, %v808_v56, %v835_v52  ;;  %v815_v49 = vadd.f32 %v814_v22, %v813_v37  ;;  %v877_v52 = vstv %s1726_s11 }
 0x172   :  { %v930_v12 = vcombine.low %v908_v20, %v915_v36  ;;  %v931_v19 = vcombine.low %v922_v10, %v929_v59 }
 0x173   :  { %v816_v61 = vrot.slane %v815_v49, 1 }
 0x174   :  { %v938_v55 = vrot.slane %v930_v12, %v907_v50  ;;  %v945_v33 = vrot.slane %v931_v19, %v907_v50 }
 0x175   :  { %v817_v8 = vadd.f32 %v816_v61, %v815_v49 }
 0x176   :  { %v946_v57 = vcombine.low %v938_v55, %v945_v33 }
 0x177   :  { %v839_v63 = vsel %vm838_vm10, %v817_v8, %v837_v35 }
 0x178   :  { %v841_v42 = vadd.f32 %v839_v63, %v744_v9 }
 0x17a   :  { %842 = vst.msk [vmem:[#allocation2] sm:$0xff] %vm46_vm0, %v841_v42 }
 0x181   :  { %v849_v32 = vld [vmem:[#allocation2] sm:$0xff] }
 0x182   :  { %v857_v31 = vmul.f32 %v1017_v11, %v849_v32 }
 0x184   :  { %v858_v51 = vsel %vm46_vm0, %v857_v31, 0.0  ;;  %vm949_vm0 = vcmask 7168  }
 0x185   :  { %859 = vadd.xlane.f32.xlu0 %v858_v51 }
 0x212   :  { %v860_v1 = vpop.xlane.xlu0 %859 }
 0x213   :  { %v878_v16 = vmul.f32 %v877_v52, %v860_v1 }
 0x215   :  { %v948_v47 = vadd.f32 %v946_v57, %v878_v16 }
 0x217   :  { %950 = vst.msk [vmem:[%s1764_s6] sm:$0xff] %vm949_vm0, %v948_v47 }
 0x218   :  { %955 = vsyncpa [#allocation6], 1 }

</bundles_post_ra>
